<compile_context>
chip_gen: v7x
topology: tpu7x:2x2x1
jax: 0.10.0
libtpu: 0.0.40
codegen_flags: <defaults>
</compile_context>

<pallas_src>
import jax
import jax.numpy as jnp
from jax.experimental import pallas as pl
from jax.experimental.pallas import tpu as pltpu

IN_F, HID_F, OUT_F = 4, 5, 3          # nn.Linear(4,5), nn.Linear(5,3)
SUBLANE = 8                           # batch tile must be a multiple of 8
MAX_TILE = 1024                       # rows per grid step (amortizes ~0.35us/step,
                                      # tiny VMEM footprint even on v7x's 64 MiB)


def _round_up(n, m):
    return ((n + m - 1) // m) * m


def _mlp_kernel(x_ref, w1_ref, b1_ref, w2_ref, b2_ref, o_ref):
    # First linear + sigmoid (MXU matmul, f32 accumulation; Mosaic handles
    # the sub-tile K=4 / N=5 internally).
    h = jnp.dot(x_ref[...], w1_ref[...], preferred_element_type=jnp.float32)
    h = jax.nn.sigmoid(h + b1_ref[...])          # b1 is (1, HID_F), broadcasts
    # Second linear + sigmoid.
    y = jnp.dot(h, w2_ref[...], preferred_element_type=jnp.float32)
    o_ref[...] = jax.nn.sigmoid(y + b2_ref[...]).astype(o_ref.dtype)


def iris_two_layer_nn(x, w1, b1, w2, b2):
    """x: (B, 4) f32; w1: (4,5); b1: (5,); w2: (5,3); b2: (3,). Returns (B, 3)."""
    x = x.astype(jnp.float32)
    B = x.shape[0]

    # Batch tile: multiple of 8 sublanes, capped at MAX_TILE rows.
    tb = min(MAX_TILE, _round_up(max(B, 1), SUBLANE))
    b_pad = _round_up(B, tb)
    if b_pad != B:
        x = jnp.pad(x, ((0, b_pad - B), (0, 0)))   # only the batch axis

    w1 = w1.astype(jnp.float32)
    w2 = w2.astype(jnp.float32)
    b1_2d = b1.astype(jnp.float32).reshape(1, HID_F)
    b2_2d = b2.astype(jnp.float32).reshape(1, OUT_F)

    weight_bytes = 4 * (IN_F * HID_F + HID_F + HID_F * OUT_F + OUT_F)
    cost = pl.CostEstimate(
        flops=2 * b_pad * (IN_F * HID_F + HID_F * OUT_F),
        transcendentals=b_pad * (HID_F + OUT_F),
        bytes_accessed=b_pad * 4 * (IN_F + OUT_F) + weight_bytes,
    )

    out = pl.pallas_call(
        _mlp_kernel,
        out_shape=jax.ShapeDtypeStruct((b_pad, OUT_F), jnp.float32),
        grid=(b_pad // tb,),
        in_specs=[
            pl.BlockSpec((tb, IN_F), lambda i: (i, 0)),       # x: tiled over batch
            pl.BlockSpec((IN_F, HID_F), lambda i: (0, 0)),    # W1: resident
            pl.BlockSpec((1, HID_F), lambda i: (0, 0)),       # b1: resident
            pl.BlockSpec((HID_F, OUT_F), lambda i: (0, 0)),   # W2: resident
            pl.BlockSpec((1, OUT_F), lambda i: (0, 0)),       # b2: resident
        ],
        out_specs=pl.BlockSpec((tb, OUT_F), lambda i: (i, 0)),
        compiler_params=pltpu.CompilerParams(
            dimension_semantics=("parallel",)),               # megacore on v7x
        cost_estimate=cost,
    )(x, w1, b1_2d, w2, b2_2d)

    return out[:B] if b_pad != B else out


def _init_params(key):
    """Deterministic PyTorch-style (uniform +/- 1/sqrt(fan_in)) initialization."""
    k1, k2, k3, k4 = jax.random.split(key, 4)
    bound1 = 1.0 / jnp.sqrt(jnp.float32(IN_F))
    bound2 = 1.0 / jnp.sqrt(jnp.float32(HID_F))
    w1 = jax.random.uniform(k1, (IN_F, HID_F), jnp.float32, -bound1, bound1)
    b1 = jax.random.uniform(k2, (HID_F,), jnp.float32, -bound1, bound1)
    w2 = jax.random.uniform(k3, (HID_F, OUT_F), jnp.float32, -bound2, bound2)
    b2 = jax.random.uniform(k4, (OUT_F,), jnp.float32, -bound2, bound2)
    return w1, b1, w2, b2


def _reference(x, w1, b1, w2, b2):
    h = jax.nn.sigmoid(x @ w1 + b1)
    return jax.nn.sigmoid(h @ w2 + b2)


if __name__ == "__main__":
    key = jax.random.PRNGKey(0)
    kx, kx2, kp = jax.random.split(key, 3)
    w1, b1, w2, b2 = _init_params(kp)

    # Aligned batch (no padding path).
    batch = 8
    x = jax.random.normal(kx, (batch, IN_F), jnp.float32)
    out = jax.block_until_ready(iris_two_layer_nn(x, w1, b1, w2, b2))
    ref = _reference(x, w1, b1, w2, b2)
    assert out.shape == (batch, OUT_F), out.shape
    assert jnp.allclose(out, ref, atol=1e-5, rtol=1e-5), (
        f"max abs err {jnp.max(jnp.abs(out - ref))}")

    # Ragged batch (exercises batch padding + final slice).
    batch2 = 13
    x2 = jax.random.normal(kx2, (batch2, IN_F), jnp.float32)
    out2 = jax.block_until_ready(iris_two_layer_nn(x2, w1, b1, w2, b2))
    ref2 = _reference(x2, w1, b1, w2, b2)
    assert out2.shape == (batch2, OUT_F), out2.shape
    assert jnp.allclose(out2, ref2, atol=1e-5, rtol=1e-5), (
        f"max abs err {jnp.max(jnp.abs(out2 - ref2))}")

    print("KERNEL_OK")
</pallas_src>

<mosaic_0001>
module attributes {stable_mosaic.version = 11 : i64} {
  func.func @_mlp_kernel(%arg0: i32, %arg1: memref<8x4xf32, #tpu.memory_space<vmem>>, %arg2: memref<4x5xf32, #tpu.memory_space<vmem>>, %arg3: memref<1x5xf32, #tpu.memory_space<vmem>>, %arg4: memref<5x3xf32, #tpu.memory_space<vmem>>, %arg5: memref<1x3xf32, #tpu.memory_space<vmem>>, %arg6: memref<8x3xf32, #tpu.memory_space<vmem>>) attributes {dimension_semantics = [#tpu.dimension_semantics<parallel>], iteration_bounds = array<i64: 1>, scalar_prefetch = 0 : i64, scratch_operands = 0 : i64, tpu.core_type = #tpu.core_type<tc>, window_params = [{transform_indices = @transform_0, window_bounds = array<i64: 8, 4>}, {pipeline_mode = #tpu.pipeline_mode<synchronous>, transform_indices = @transform_1, window_bounds = array<i64: 4, 5>}, {pipeline_mode = #tpu.pipeline_mode<synchronous>, transform_indices = @transform_2, window_bounds = array<i64: 1, 5>}, {pipeline_mode = #tpu.pipeline_mode<synchronous>, transform_indices = @transform_3, window_bounds = array<i64: 5, 3>}, {pipeline_mode = #tpu.pipeline_mode<synchronous>, transform_indices = @transform_4, window_bounds = array<i64: 1, 3>}, {transform_indices = @transform_5, window_bounds = array<i64: 8, 3>}]} {
    %c0 = arith.constant 0 : index
    %c0_0 = arith.constant 0 : index
    %0 = vector.load %arg1[%c0, %c0_0] : memref<8x4xf32, #tpu.memory_space<vmem>>, vector<8x4xf32>
    %c0_1 = arith.constant 0 : index
    %c0_2 = arith.constant 0 : index
    %1 = vector.load %arg2[%c0_1, %c0_2] : memref<4x5xf32, #tpu.memory_space<vmem>>, vector<4x5xf32>
    %cst = arith.constant dense<0.000000e+00> : vector<8x5xf32>
    %2 = tpu.matmul %0, %1, %cst {dimension_numbers = #tpu.dot_dimension_numbers<[1], [0], [0], [1], [0, 0, 1, 1], [], []>} : vector<8x4xf32>, vector<4x5xf32>, vector<8x5xf32> -> vector<8x5xf32>
    %c0_3 = arith.constant 0 : index
    %c0_4 = arith.constant 0 : index
    %3 = vector.load %arg3[%c0_3, %c0_4] : memref<1x5xf32, #tpu.memory_space<vmem>>, vector<1x5xf32>
    %4 = vector.broadcast %3 : vector<1x5xf32> to vector<8x5xf32>
    %5 = arith.addf %2, %4 : vector<8x5xf32>
    %6 = arith.negf %5 : vector<8x5xf32>
    %7 = math.exp %6 : vector<8x5xf32>
    %cst_5 = arith.constant 1.000000e+00 : f32
    %8 = vector.broadcast %cst_5 : f32 to vector<8x5xf32>
    %9 = arith.addf %8, %7 : vector<8x5xf32>
    %10 = arith.divf %8, %9 : vector<8x5xf32>
    %c0_6 = arith.constant 0 : index
    %c0_7 = arith.constant 0 : index
    %11 = vector.load %arg4[%c0_6, %c0_7] : memref<5x3xf32, #tpu.memory_space<vmem>>, vector<5x3xf32>
    %cst_8 = arith.constant dense<0.000000e+00> : vector<8x3xf32>
    %12 = tpu.matmul %10, %11, %cst_8 {dimension_numbers = #tpu.dot_dimension_numbers<[1], [0], [0], [1], [0, 0, 1, 1], [], []>} : vector<8x5xf32>, vector<5x3xf32>, vector<8x3xf32> -> vector<8x3xf32>
    %c0_9 = arith.constant 0 : index
    %c0_10 = arith.constant 0 : index
    %13 = vector.load %arg5[%c0_9, %c0_10] : memref<1x3xf32, #tpu.memory_space<vmem>>, vector<1x3xf32>
    %14 = vector.broadcast %13 : vector<1x3xf32> to vector<8x3xf32>
    %15 = arith.addf %12, %14 : vector<8x3xf32>
    %16 = arith.negf %15 : vector<8x3xf32>
    %17 = math.exp %16 : vector<8x3xf32>
    %cst_11 = arith.constant 1.000000e+00 : f32
    %18 = vector.broadcast %cst_11 : f32 to vector<8x3xf32>
    %19 = arith.addf %18, %17 : vector<8x3xf32>
    %20 = arith.divf %18, %19 : vector<8x3xf32>
    %c0_12 = arith.constant 0 : index
    %c0_13 = arith.constant 0 : index
    %21 = vector.load %arg6[%c0_12, %c0_13] : memref<8x3xf32, #tpu.memory_space<vmem>>, vector<8x3xf32>
    tpu.vector_store %arg6[%c0_12, %c0_13], %20 {strides = array<i32>} : memref<8x3xf32, #tpu.memory_space<vmem>>, vector<8x3xf32>,
    return
  }
  func.func @transform_0(%arg0: i32) -> (i32, i32) {
    %c0_i32 = arith.constant 0 : i32
    %c0_i32_0 = arith.constant 0 : i32
    return %arg0, %c0_i32 : i32, i32
  }
  func.func @transform_1(%arg0: i32) -> (i32, i32) {
    %c0_i32 = arith.constant 0 : i32
    %c0_i32_0 = arith.constant 0 : i32
    %c0_i32_1 = arith.constant 0 : i32
    return %c0_i32, %c0_i32_0 : i32, i32
  }
  func.func @transform_2(%arg0: i32) -> (i32, i32) {
    %c0_i32 = arith.constant 0 : i32
    %c0_i32_0 = arith.constant 0 : i32
    %c0_i32_1 = arith.constant 0 : i32
    return %c0_i32, %c0_i32_0 : i32, i32
  }
  func.func @transform_3(%arg0: i32) -> (i32, i32) {
    %c0_i32 = arith.constant 0 : i32
    %c0_i32_0 = arith.constant 0 : i32
    %c0_i32_1 = arith.constant 0 : i32
    return %c0_i32, %c0_i32_0 : i32, i32
  }
  func.func @transform_4(%arg0: i32) -> (i32, i32) {
    %c0_i32 = arith.constant 0 : i32
    %c0_i32_0 = arith.constant 0 : i32
    %c0_i32_1 = arith.constant 0 : i32
    return %c0_i32, %c0_i32_0 : i32, i32
  }
  func.func @transform_5(%arg0: i32) -> (i32, i32) {
    %c0_i32 = arith.constant 0 : i32
    %c0_i32_0 = arith.constant 0 : i32
    return %arg0, %c0_i32 : i32, i32
  }
}

</mosaic_0001>

<bundles_post_ra>
// kernel: tpu_custom_call.1
= control target key start
LH: loop header
LB: loop body
LE: loop exit
PB: predicated region body
PF: predicated region fallthrough
CT: control target
= control target key end

     0   :  { %vm33_vm0 = vcmask 1043456   ;;  %vm29_vm1 = vcmask 31744   ;;  %v243_v0 = vmov 0.0   ;;  %vm244_vm2 = vmmov 0   ;;  %s293_s1 = inlined_call_operand.vmem [shape: f32[4,5], index: 1, kind: input, shape index: {}]   ;;  %s294_s0 = inlined_call_operand.vmem [shape: f32[8,4], index: 0, kind: input, shape index: {}]   ;;  %s295_s3 = inlined_call_operand.vmem [shape: f32[5,3], index: 3, kind: input, shape index: {}]   ;;  %s296_s2 = inlined_call_operand.vmem [shape: f32[1,5], index: 2, kind: input, shape index: {}]   ;;  %s297_s4 = inlined_call_operand.vmem [shape: f32[1,3], index: 4, kind: input, shape index: {}]   ;;  %s298_s5 = inlined_call_operand.vmem [shape: f32[8,3], index: 5, kind: output, shape index: {}]  }
   0x1   :  { %223 = vmatprep.subr.mxu0 %v243_v0  ;;  %v21_v1 = vld [vmem:[%s293_s1] sm:$0xf]  ;;  %225 = vmatprep.mubr.msk.f32.mxu0 %vm244_vm2, %v243_v0  ;;  %vm125_vm3 = vcmask 1044480   ;;  %vm121_vm4 = vcmask 39936   ;;  %vm205_vm5 = vcmask 23552  }
   0x2   :  { %v20_v2 = vld [vmem:[%s294_s0] sm:$0xff]  ;;  %224 = vmatpush3.msk.msra.mxu0 %vm33_vm0, %v21_v1  ;;  %228 = vmatprep.subr.mxu1 %v243_v0 }
   0x3   :  { %226 = vmatmul.mubr.msk.f32.vlgmr.msra.gmra.mrb[0].mxu0 %vm29_vm1, %v20_v2  ;;  %230 = vmatprep.mubr.msk.f32.mxu1 %vm244_vm2, %v243_v0  ;;  %v113_v3 = vld [vmem:[%s295_s3] sm:$0x1f] }
   0x4   :  { %229 = vmatpush3.msk.msra.mxu1 %vm125_vm3, %v113_v3  ;;  %v211_v4 = vld [vmem:[%s296_s2] ss:$0 sm:$0xff] }
   0x5   :  { %v215_v12 = vld [vmem:[%s297_s4] ss:$0 sm:$0xff] }
  0xd6   :  { %v103_v5 = vpop.f32.mrb[0].mxu0 }
  0xd7   :  { %v104_v6 = vadd.f32 %v211_v4, %v103_v5  ;;  %v227_v7 = vpop.f32.mrb[1].mxu0 }
  0xd9   :  { %v214_v8 = vmul.f32 -1.442695, %v104_v6 }
  0xdb   :  { %235 = vpow2.f32 %v214_v8 }
  0xe5   :  { %v236_v9 = vpop.eup %235 }
  0xe6   :  { %v110_v10 = vadd.f32 1.0, %v236_v9 }
  0xe8   :  { %237 = vrcp.f32 %v110_v10 }
  0xf2   :  { %v238_v11 = vpop.eup %237 }
  0xf3   :  { %231 = vmatmul.mubr.msk.f32.vlgmr.msra.gmra.mrb[0].mxu1 %vm121_vm4, %v238_v11 }
 0x1c6   :  { %v195_v13 = vpop.f32.mrb[0].mxu1 }
 0x1c7   :  { %v196_v14 = vadd.f32 %v215_v12, %v195_v13  ;;  %v232_v15 = vpop.f32.mrb[1].mxu1 }
 0x1c9   :  { %v218_v16 = vmul.f32 -1.442695, %v196_v14 }
 0x1cb   :  { %239 = vpow2.f32 %v218_v16 }
 0x1d5   :  { %v240_v17 = vpop.eup %239 }
 0x1d6   :  { %v202_v18 = vadd.f32 1.0, %v240_v17 }
 0x1d8   :  { %241 = vrcp.f32 %v202_v18 }
 0x1e2   :  { %v242_v19 = vpop.eup %241 }
 0x1e3   :  { %206 = vst.msk [vmem:[%s298_s5] sm:$0xff] %vm205_vm5, %v242_v19 }

</bundles_post_ra>
